<compile_context>
chip_gen: v5e
topology: v5e:2x2
jax: 0.10.0
libtpu: 0.0.40
codegen_flags: <defaults>
</compile_context>

<pallas_src>
import functools
import math

import numpy as np
import jax
import jax.numpy as jnp
from jax.experimental import pallas as pl
from jax.experimental.pallas import tpu as pltpu


def _cdiv(a, b):
    return (a + b - 1) // b


def _round_up(x, m):
    return _cdiv(x, m) * m


def _lane_pad(n):          # last-dim VMEM padding (128 lanes)
    return _round_up(n, 128)


def _sub_pad(n):           # second-to-last-dim VMEM padding (8 sublanes, f32)
    return _round_up(n, 8)


def _vmem_capacity_bytes():
    """Physical VMEM per TensorCore (128 MiB v5e/v6e, 64 MiB v7x)."""
    try:
        return int(pltpu.get_tpu_info().vmem_capacity_bytes)
    except Exception:
        return 64 * 1024 * 1024  # conservative (v7x-sized) fallback


def _tex_cycle_kernel(flow_ref, side_ref, s_ref, out_ref, *,
                      inv_nrr, two_g, npk10, packed_rows, tile_pr, ragged):
    """One grid step = one tile of `tile_pr` packed rows (g original rows each).

    flow_ref : (tile_pr, L)        L = g*nrr2, lane-dense when possible
    side_ref : (tile_pr, 4g)       [prob | mask], lane-packed side data
    s_ref    : (L, 2g)             constant 0/1 de-interleave matrix
    out_ref  : (npk10+1, 2g)       rows [0, npk10) = per-row (x, y) averages of
                                   this tile's first npk10 packed rows (only
                                   tile 0's are consumed); row npk10 = per-tile
                                   column sums of the squared masked error.
    """
    f = flow_ref[...]                                   # (tile_pr, L)
    s = s_ref[...]                                      # (L, 2g)

    # Per-original-row x/y sums on the MXU (single pass over the flow block;
    # VPU/XLU stay free, kernel stays HBM-bound).
    sums = jnp.dot(f, s, preferred_element_type=jnp.float32)   # (tile_pr, 2g)
    avg = sums * inv_nrr                                        # (tile_pr, 2g)

    pm = side_ref[...].astype(jnp.float32)              # (tile_pr, 4g)
    p = pm[:, :two_g]                                   # prob, layout-matched
    m = pm[:, two_g:]                                   # 0/1 mask, same layout
    d = avg - p
    contrib = d * d * m                                 # mask is 0/1: (a*m-p*m)^2 == (a-p)^2*m

    if ragged:
        # Last tile extends past packed_rows; drop padded rows (select, so any
        # garbage/NaN read there is discarded, never multiplied in).
        base = pl.program_id(0) * tile_pr
        ridx = base + jax.lax.broadcasted_iota(jnp.int32, contrib.shape, 0)
        contrib = jnp.where(ridx < packed_rows, contrib, 0.0)

    # Fused avg_flow[0, 0:10, :] (meaningful only for tile 0) + partial SSE.
    out_ref[0:npk10, :] = avg[0:npk10, :]
    out_ref[npk10:npk10 + 1, :] = jnp.sum(contrib, axis=0, keepdims=True)


@jax.jit
def tex_cycle(flow, prob, aggr_info):
    """flow: (nb, nf, nr, nr, 2); prob: (nb, nf, 2); aggr_info: (nb, n_agg).

    Returns (loss, avg_flow[0, 0:10, :]) matching the PyTorch module.
    """
    nb, nf, nr = flow.shape[0], flow.shape[1], flow.shape[2]
    nrr = nr * nr
    nrr2 = 2 * nrr
    rows = nb * nf

    # ---- Lane packing: fold g original rows per kernel row so the flow block
    #      is 128-lane dense.  Pure reshape (no HBM copy). ----
    g = 128 // math.gcd(nrr2, 128)
    if rows % g != 0:
        g = 1                       # fall back to lane-padded blocks (still correct)
    L = g * nrr2
    two_g = 2 * g
    packed_rows = rows // g

    flow_pk = flow.reshape(packed_rows, L)

    # ---- Packed side input [prob | mask] (tiny; one DMA stream). ----
    prob_pk = prob.reshape(rows, 2).astype(jnp.float32).reshape(packed_rows, two_g)
    ids = aggr_info.astype(jnp.int32)                   # torch.unique is redundant: set is idempotent
    mask_bf = jnp.zeros((nb, nf), jnp.float32).at[
        jnp.arange(nb)[:, None], ids].set(1.0)
    mask_pk = jnp.broadcast_to(mask_bf.reshape(rows, 1), (rows, 2)).reshape(
        packed_rows, two_g)
    side = jnp.concatenate([prob_pk, mask_pk], axis=1)  # (packed_rows, 4g)

    # ---- Constant de-interleave matrix S (0/1): column 2j+c sums coordinate c
    #      of group row j.  Matches prob/mask layout above exactly. ----
    kk = np.arange(L)
    cc = np.arange(two_g)
    s_np = ((kk[:, None] // nrr2 == cc[None, :] // 2)
            & (kk[:, None] % 2 == cc[None, :] % 2)).astype(np.float32)
    s_mat = jnp.asarray(s_np, dtype=flow.dtype)

    # ---- Padding-aware tile selection + explicit VMEM limit. ----
    itemsize = jnp.dtype(flow.dtype).itemsize
    per_pr_flow = _lane_pad(L) * itemsize
    per_pr_side = _lane_pad(4 * g) * 4
    per_pr = per_pr_flow + per_pr_side                  # one buffer set, per packed row

    vmem_cap = _vmem_capacity_bytes()
    # One (flow+side) buffer set per pipeline stage; double-buffered by Pallas.
    budget = max(1 << 20, min(16 << 20, vmem_cap // 6))
    max_pr = max(8, (budget // per_pr) // 8 * 8)

    if packed_rows < 16 and packed_rows <= max_pr:
        tile_pr = packed_rows                           # single full-extent block
    else:
        # >= 2 tiles so v7x megacore can shard the "parallel" axis over both TCs.
        tile_pr = max(8, min(max_pr, _round_up(_cdiv(packed_rows, 2), 8)))
        nt = _cdiv(packed_rows, tile_pr)
        if nt > 1 and nt % 2 == 1:                      # best-effort even tile count
            cand = max(8, _round_up(_cdiv(packed_rows, nt + 1), 8))
            if _cdiv(packed_rows, cand) % 2 == 0:
                tile_pr = cand
    num_tiles = _cdiv(packed_rows, tile_pr)
    ragged = (packed_rows % tile_pr) != 0

    # avg_flow[0, 0:10] lives in the first npk10 packed rows of tile 0.
    k10 = min(10, nf)
    npk10_req = _cdiv(k10, g)
    fused_avg10 = npk10_req <= tile_pr                  # always true except degenerate tiles
    npk10 = min(npk10_req, tile_pr)

    flow_blk = _sub_pad(tile_pr) * _lane_pad(L) * itemsize
    side_blk = _sub_pad(tile_pr) * _lane_pad(4 * g) * 4
    s_blk = _sub_pad(L) * _lane_pad(two_g) * itemsize
    out_blk = _sub_pad(npk10 + 1) * _lane_pad(two_g) * 4
    vmem_limit = int(min(0.85 * vmem_cap,
                         max(32 << 20,
                             3 * (flow_blk + side_blk + s_blk + out_blk) + (8 << 20))))

    kernel = functools.partial(
        _tex_cycle_kernel,
        inv_nrr=1.0 / nrr, two_g=two_g, npk10=npk10,
        packed_rows=packed_rows, tile_pr=tile_pr, ragged=ragged)

    out = pl.pallas_call(
        kernel,
        out_shape=jax.ShapeDtypeStruct((num_tiles, npk10 + 1, two_g), jnp.float32),
        grid=(num_tiles,),
        in_specs=[
            pl.BlockSpec((tile_pr, L), lambda t: (t, 0)),
            pl.BlockSpec((tile_pr, 4 * g), lambda t: (t, 0)),
            pl.BlockSpec((L, two_g), lambda t: (0, 0)),      # constant, stays resident
        ],
        # One small block per tile -> no output revisits -> safe "parallel" axis.
        out_specs=pl.BlockSpec((None, npk10 + 1, two_g), lambda t: (t, 0, 0)),
        compiler_params=pltpu.CompilerParams(
            dimension_semantics=("parallel",),
            vmem_limit_bytes=vmem_limit),
    )(flow_pk, side, s_mat)

    sse = jnp.sum(out[:, npk10, :])                     # per-tile partial sums
    loss = sse / (rows * 2)                             # MSE mean over nb*nf*2

    if fused_avg10:
        avg10 = out[0, :npk10, :].reshape(npk10 * g, 2)[:k10]
    else:
        # Degenerate tiny-tile fallback (tile 0 doesn't cover the first 10 rows).
        avg10 = jnp.mean(flow[0, :k10].reshape(k10, nrr, 2).astype(jnp.float32), axis=1)
    return loss, avg10


def _ref(flow, prob, aggr_info):
    """NumPy reference mirroring the PyTorch forward."""
    flow = np.asarray(flow, np.float32)
    prob = np.asarray(prob, np.float32)
    aggr = np.asarray(aggr_info)
    nb, nf = flow.shape[0], flow.shape[1]
    avg_flow = flow.reshape(nb, nf, -1, 2).mean(axis=2)
    mask = np.zeros((nb, nf, 2), np.float32)
    for cnt in range(nb):
        fids = np.unique(aggr[cnt]).astype(np.int64)
        mask[cnt, fids, :] = 1.0
    diff = avg_flow * mask - prob * mask
    return (diff * diff).mean(), avg_flow[0, 0:10, :]


if __name__ == "__main__":
    key = jax.random.PRNGKey(0)
    nb, nf, nr, n_agg = 2, 16, 4, 8
    k1, k2, k3 = jax.random.split(key, 3)
    flow = jax.random.uniform(k1, (nb, nf, nr, nr, 2), jnp.float32, -1.0, 1.0)
    prob = jax.random.uniform(k2, (nb, nf, 2), jnp.float32, -1.0, 1.0)
    # aggr_info carries face ids (floats in the original code, hence .long()).
    aggr_info = jax.random.randint(k3, (nb, n_agg), 0, nf).astype(jnp.float32)

    loss, avg10 = tex_cycle(flow, prob, aggr_info)
    jax.block_until_ready((loss, avg10))

    ref_loss, ref_avg10 = _ref(flow, prob, aggr_info)
    # Tolerance covers the MXU's default (reduced) f32 matmul precision; the
    # reduction matrix is 0/1 so the worst case is per-element bf16 truncation
    # (~1e-3 relative), far below any structural error.
    assert np.allclose(np.asarray(loss), ref_loss, atol=2e-3, rtol=2e-3), (
        float(loss), float(ref_loss))
    assert np.allclose(np.asarray(avg10), ref_avg10, atol=2e-3), (
        np.asarray(avg10), ref_avg10)
    print("KERNEL_OK")
</pallas_src>

<mosaic_0001>
module attributes {stable_mosaic.version = 11 : i64} {
  func.func @_tex_cycle_kernel(%arg0: i32, %arg1: memref<8x128xf32, #tpu.memory_space<vmem>>, %arg2: memref<8x16xf32, #tpu.memory_space<vmem>>, %arg3: memref<128x8xf32, #tpu.memory_space<vmem>>, %arg4: memref<1x4x8xf32, #tpu.memory_space<vmem>>) attributes {dimension_semantics = [#tpu.dimension_semantics<parallel>], iteration_bounds = array<i64: 1>, scalar_prefetch = 0 : i64, scratch_operands = 0 : i64, tpu.core_type = #tpu.core_type<tc>, window_params = [{transform_indices = @transform_0, window_bounds = array<i64: 8, 128>}, {transform_indices = @transform_1, window_bounds = array<i64: 8, 16>}, {pipeline_mode = #tpu.pipeline_mode<synchronous>, transform_indices = @transform_2, window_bounds = array<i64: 128, 8>}, {transform_indices = @transform_3, window_bounds = array<i64: 1, 4, 8>}]} {
    %c0 = arith.constant 0 : index
    %c0_0 = arith.constant 0 : index
    %0 = vector.load %arg1[%c0, %c0_0] : memref<8x128xf32, #tpu.memory_space<vmem>>, vector<8x128xf32>
    %c0_1 = arith.constant 0 : index
    %c0_2 = arith.constant 0 : index
    %1 = vector.load %arg3[%c0_1, %c0_2] : memref<128x8xf32, #tpu.memory_space<vmem>>, vector<128x8xf32>
    %cst = arith.constant dense<0.000000e+00> : vector<8x8xf32>
    %2 = tpu.matmul %0, %1, %cst {dimension_numbers = #tpu.dot_dimension_numbers<[1], [0], [0], [1], [0, 0, 1, 1], [], []>} : vector<8x128xf32>, vector<128x8xf32>, vector<8x8xf32> -> vector<8x8xf32>
    %cst_3 = arith.constant 6.250000e-02 : f32
    %3 = vector.broadcast %cst_3 : f32 to vector<8x8xf32>
    %4 = arith.mulf %2, %3 : vector<8x8xf32>
    %c0_4 = arith.constant 0 : index
    %c0_5 = arith.constant 0 : index
    %5 = vector.load %arg2[%c0_4, %c0_5] : memref<8x16xf32, #tpu.memory_space<vmem>>, vector<8x16xf32>
    %6 = vector.extract_strided_slice %5 {offsets = [0, 0], sizes = [8, 8], strides = [1, 1]} : vector<8x16xf32> to vector<8x8xf32>
    %7 = vector.extract_strided_slice %5 {offsets = [0, 8], sizes = [8, 8], strides = [1, 1]} : vector<8x16xf32> to vector<8x8xf32>
    %8 = arith.subf %4, %6 : vector<8x8xf32>
    %9 = arith.mulf %8, %8 : vector<8x8xf32>
    %10 = arith.mulf %9, %7 : vector<8x8xf32>
    %11 = vector.extract_strided_slice %4 {offsets = [0, 0], sizes = [3, 8], strides = [1, 1]} : vector<8x8xf32> to vector<3x8xf32>
    %c0_6 = arith.constant 0 : index
    %c0_7 = arith.constant 0 : index
    %c0_8 = arith.constant 0 : index
    %12 = vector.load %arg4[%c0_6, %c0_7, %c0_8] : memref<1x4x8xf32, #tpu.memory_space<vmem>>, vector<1x3x8xf32>
    %13 = vector.shape_cast %12 : vector<1x3x8xf32> to vector<3x8xf32>
    %14 = vector.shape_cast %11 : vector<3x8xf32> to vector<1x3x8xf32>
    tpu.vector_store %arg4[%c0_6, %c0_7, %c0_8], %14 {strides = array<i32>} : memref<1x4x8xf32, #tpu.memory_space<vmem>>, vector<1x3x8xf32>,
    %cst_9 = arith.constant dense<0.000000e+00> : vector<8xf32>
    %15 = vector.multi_reduction <add>, %10, %cst_9 [0] : vector<8x8xf32> to vector<8xf32>
    %16 = vector.shape_cast %15 : vector<8xf32> to vector<1x8xf32>
    %c0_10 = arith.constant 0 : index
    %c3 = arith.constant 3 : index
    %c0_11 = arith.constant 0 : index
    %17 = vector.load %arg4[%c0_10, %c3, %c0_11] : memref<1x4x8xf32, #tpu.memory_space<vmem>>, vector<1x1x8xf32>
    %18 = vector.shape_cast %17 : vector<1x1x8xf32> to vector<1x8xf32>
    %19 = vector.shape_cast %16 : vector<1x8xf32> to vector<1x1x8xf32>
    tpu.vector_store %arg4[%c0_10, %c3, %c0_11], %19 {strides = array<i32>} : memref<1x4x8xf32, #tpu.memory_space<vmem>>, vector<1x1x8xf32>,
    return
  }
  func.func @transform_0(%arg0: i32) -> (i32, i32) {
    %c0_i32 = arith.constant 0 : i32
    %c0_i32_0 = arith.constant 0 : i32
    return %arg0, %c0_i32 : i32, i32
  }
  func.func @transform_1(%arg0: i32) -> (i32, i32) {
    %c0_i32 = arith.constant 0 : i32
    %c0_i32_0 = arith.constant 0 : i32
    return %arg0, %c0_i32 : i32, i32
  }
  func.func @transform_2(%arg0: i32) -> (i32, i32) {
    %c0_i32 = arith.constant 0 : i32
    %c0_i32_0 = arith.constant 0 : i32
    %c0_i32_1 = arith.constant 0 : i32
    return %c0_i32, %c0_i32_0 : i32, i32
  }
  func.func @transform_3(%arg0: i32) -> (i32, i32, i32) {
    %c0_i32 = arith.constant 0 : i32
    %c0_i32_0 = arith.constant 0 : i32
    %c0_i32_1 = arith.constant 0 : i32
    return %arg0, %c0_i32, %c0_i32_0 : i32, i32, i32
  }
}

</mosaic_0001>

<bundles_post_ra>
// kernel: squeeze.3
= control target key start
LH: loop header
LB: loop body
LE: loop exit
PB: predicated region body
PF: predicated region fallthrough
CT: control target
= control target key end

     0   :  { %s34_s8 = smov 122   ;;  %s35_s9 = smov 124   ;;  %vm7_vm0 = vcmask 15360   ;;  %s61_s0 = inlined_call_operand.vmem [shape: f32[1,3,8], index: 0, kind: input, shape index: {}]   ;;  %s62_s1 = inlined_call_operand.vmem [shape: f32[12,2], index: 1, kind: output, shape index: {}]  }
   0x1   :  { %v4_v0 = vld [vmem:[%s61_s0] sm:$0xf]  ;;  %s33_s0 = smov 126  }
   0x2   :  { %5 = vst [vmem:[#allocation0] sm:$0xf] %v4_v0 }
   0x9   :  { %v9_v1 = vld [vmem:[#allocation0] sm:$0x7]  }
   0xa   :  { %v21_v2 = vld [vmem:[#allocation0] sm:$0x7]   ;;  %10 = vrot.lane.b32.xlu0 %v9_v1, %s33_s0 }
   0xb   :  { %22 = vrot.lane.b32.xlu1 %v21_v2, %s34_s8  ;;  %v15_v3 = vld [vmem:[#allocation0] sm:$0x7]  }
   0xc   :  { %v6_v4 = vld [vmem:[#allocation0] sm:$0x7]  }
   0xd   :  { %8 = vst.msk [vmem:[%s62_s1] ss:$4 sm:$0x7] %vm7_vm0, %v6_v4  }
  0x12   :  { %16 = vrot.lane.b32.xlu0 %v15_v3, %s35_s9 }
  0x7c   :  { %v11_v5 = vpop.permute.xlu0 %10  }
  0x7d   :  { %v23_v6 = vpop.permute.xlu1 %22   ;;  %27 = vst.msk [vmem:[%s62_s1 + $0x1] ss:$4 sm:$0x7] %vm7_vm0, %v11_v5  }
  0x7e   :  { %29 = vst.msk [vmem:[%s62_s1 + $0x3] ss:$4 sm:$0x7] %vm7_vm0, %v23_v6  }
  0x84   :  { %v17_v7 = vpop.permute.xlu0 %16  }
  0x85   :  { %28 = vst.msk [vmem:[%s62_s1 + $0x2] ss:$4 sm:$0x7] %vm7_vm0, %v17_v7  }

// kernel: tex_cycle.1
= control target key start
LH: loop header
LB: loop body
LE: loop exit
PB: predicated region body
PF: predicated region fallthrough
CT: control target
= control target key end

     0   :  { %s77_s24 = smov 120   ;;  %vm60_vm0 = vcmask 59392   ;;  %vm62_vm1 = vcmask 64512   ;;  %vm70_vm2 = vcmask 57344   ;;  %s158_s2 = inlined_call_operand.vmem [shape: f32[128,8], index: 2, kind: input, shape index: {}]   ;;  %s159_s1 = inlined_call_operand.vmem [shape: f32[8,16], index: 1, kind: input, shape index: {}]   ;;  %s160_s0 = inlined_call_operand.vmem [shape: f32[8,128], index: 0, kind: input, shape index: {}]   ;;  %s161_s3 = inlined_call_operand.vmem [shape: f32[1,4,8], index: 3, kind: output, shape index: {}]  }
   0x1   :  { %v30_v0 = vld [vmem:[%s158_s2 + $0x78] sm:$0xff]  ;;  %v29_v1 = vld [vmem:[%s158_s2 + $0x70] sm:$0xff]  ;;  %v28_v2 = vld [vmem:[%s158_s2 + $0x68] sm:$0xff] }
   0x2   :  { %31 = vmatpush.msra.mxu0 %v30_v0  ;;  %v27_v3 = vld [vmem:[%s158_s2 + $0x60] sm:$0xff]  ;;  %v26_v5 = vld [vmem:[%s158_s2 + $0x58] sm:$0xff]  ;;  %v25_v6 = vld [vmem:[%s158_s2 + $0x50] sm:$0xff] }
   0x3   :  { %v52_v4 = vld [vmem:[%s159_s1] sm:$0xff]  ;;  %v24_v7 = vld [vmem:[%s158_s2 + $0x48] sm:$0xff]  ;;  %v22_v9 = vld [vmem:[%s158_s2 + $0x38] sm:$0xff] }
   0x4   :  { %32 = vmatpush.msra.mxu0 %v29_v1  ;;  %56 = vrot.lane.b32.xlu0 %v52_v4, %s77_s24  ;;  %v23_v8 = vld [vmem:[%s158_s2 + $0x40] sm:$0xff]  ;;  %v21_v10 = vld [vmem:[%s158_s2 + $0x30] sm:$0xff]  ;;  %v20_v11 = vld [vmem:[%s158_s2 + $0x28] sm:$0xff] }
   0x5   :  { %v19_v12 = vld [vmem:[%s158_s2 + $0x20] sm:$0xff]  ;;  %v18_v13 = vld [vmem:[%s158_s2 + $0x18] sm:$0xff]  ;;  %v17_v14 = vld [vmem:[%s158_s2 + $0x10] sm:$0xff] }
   0x6   :  { %33 = vmatpush.msra.mxu0 %v28_v2  ;;  %v16_v15 = vld [vmem:[%s158_s2 + $0x8] sm:$0xff]  ;;  %v15_v16 = vld [vmem:[%s158_s2] sm:$0xff] }
   0x7   :  { %v14_v17 = vld [vmem:[%s160_s0] sm:$0xff] }
   0x8   :  { %34 = vmatpush.msra.mxu0 %v27_v3 }
   0xa   :  { %35 = vmatpush.msra.mxu0 %v26_v5 }
   0xc   :  { %36 = vmatpush.msra.mxu0 %v25_v6 }
   0xe   :  { %37 = vmatpush.msra.mxu0 %v24_v7 }
  0x10   :  { %38 = vmatpush.msra.mxu0 %v23_v8 }
  0x12   :  { %39 = vmatpush.msra.mxu0 %v22_v9 }
  0x14   :  { %40 = vmatpush.msra.mxu0 %v21_v10 }
  0x16   :  { %41 = vmatpush.msra.mxu0 %v20_v11 }
  0x18   :  { %42 = vmatpush.msra.mxu0 %v19_v12 }
  0x1a   :  { %43 = vmatpush.msra.mxu0 %v18_v13 }
  0x1c   :  { %44 = vmatpush.msra.mxu0 %v17_v14 }
  0x1e   :  { %45 = vmatpush.msra.mxu0 %v16_v15 }
  0x20   :  { %46 = vmatpush.msra.mxu0 %v15_v16 }
  0x21   :  { %47 = vmatmul.f32.vlgmr.msra.gmra.mxu0 %v14_v17 }
  0x76   :  { %v57_v21 = vpop.permute.xlu0 %56 }
  0x9e   :  { %v48_v18 = vpop.f32.mrf.mxu0 }
  0x9f   :  { %v51_v19 = vmul.f32 0.0625, %v48_v18 }
  0xa1   :  { %v53_v20 = vsub.f32 %v51_v19, %v52_v4  ;;  %61 = vst.msk [vmem:[%s161_s3] sm:$0x7] %vm60_vm0, %v51_v19 }
  0xa3   :  { %v54_v22 = vmul.f32 %v53_v20, %v53_v20 }
  0xa5   :  { %v59_v23 = vmul.f32 %v57_v21, %v54_v22 }
  0xa7   :  { %v63_v24 = vsel %vm62_vm1, %v59_v23, 0.0 }
  0xa8   :  { %v64_v25 = vrot.slane %v63_v24, 4 }
  0xaa   :  { %v65_v26 = vadd.f32 %v64_v25, %v63_v24 }
  0xac   :  { %v66_v27 = vrot.slane %v65_v26, 2 }
  0xae   :  { %v67_v28 = vadd.f32 %v66_v27, %v65_v26 }
  0xb0   :  { %v68_v29 = vrot.slane %v67_v28, 1 }
  0xb2   :  { %v69_v30 = vadd.f32 %v68_v29, %v67_v28 }
  0xb4   :  { %71 = vst.msk [vmem:[%s161_s3 + $0x3] sm:$0x1] %vm70_vm2, %v69_v30 }

</bundles_post_ra>
